<compile_context>
chip_gen: v7x
topology: tpu7x:2x2x1
jax: 0.10.0
libtpu: 0.0.40
codegen_flags: <defaults>
</compile_context>

<pallas_src>
import functools
import math

import jax
import jax.numpy as jnp
from jax.experimental import pallas as pl
from jax.experimental.pallas import tpu as pltpu


_ACC_ROWS = 32                       # resident f32 accumulator rows per core (mult. of 8 and 16)
_LANE_CANDIDATES = (512, 256, 128)   # lane-dense minor dims (multiples of 128 -> unmasked vld/vst)


def _device_kind() -> str:
    try:
        return jax.devices()[0].device_kind.lower()
    except Exception:  # pragma: no cover - defensive
        return ""


def _num_tensorcores(kind: str) -> int:
    # v7x has 2 TensorCores per chip; v5e/v6e have 1.  Unknown -> 1 (always safe/correct).
    return 2 if "v7" in kind else 1


def _preferred_block_rows(kind: str) -> int:
    # (2048, 512) f32 = 4 MiB/input tile -> 16 MiB double-buffered, fits the 32 MiB
    # default scoped-VMEM on v6e/v7x.  v5e (16 MiB default) / unknown chips -> 1024.
    if "v6" in kind or "v7" in kind:
        return 2048
    return 1024


def _l1_partial_kernel(fake_ref, real_ref, out_ref, *, scale):
    """Accumulates scaled partial L1 sums into a resident (_ACC_ROWS, lanes) f32 block.

    grid = (ncores, n_k): axis 0 is "parallel" (per-core partials), axis 1 is the
    reduction axis; the output block index depends only on axis 0, so it stays resident
    in VMEM across the reduction and acts as the accumulator.
    """
    k = pl.program_id(1)

    @pl.when(k == 0)
    def _():
        out_ref[...] = jnp.zeros_like(out_ref)

    # Elementwise |fake - real| on the VPU (in the input dtype, matching nn.L1Loss),
    # accumulated in f32.
    diff = jnp.abs(fake_ref[...] - real_ref[...]).astype(jnp.float32)
    br, lanes = diff.shape
    # Fold the tile into _ACC_ROWS independent accumulator rows: pure vreg adds, no
    # cross-lane XLU reduce, no per-step SMEM scalar dependency, and a 4x shorter
    # serial add chain than an 8-row fold.
    out_ref[...] += jnp.sum(diff.reshape(br // _ACC_ROWS, _ACC_ROWS, lanes), axis=0)

    @pl.when(k == pl.num_programs(1) - 1)
    def _():
        # Fold "* weight / total" into the final write (last step has slack).
        out_ref[...] = out_ref[...] * scale


def _run_l1_kernel(fake2d, real2d, *, ncores, block_rows, n_k, scale):
    """Runs the partial-sum kernel over the first ncores*block_rows*n_k rows of the inputs."""
    rows, lanes = fake2d.shape
    kernel_rows = ncores * block_rows * n_k
    assert kernel_rows <= rows and block_rows % _ACC_ROWS == 0

    itemsize = jnp.dtype(fake2d.dtype).itemsize
    cost = pl.CostEstimate(
        flops=3 * kernel_rows * lanes,
        transcendentals=0,
        bytes_accessed=2 * kernel_rows * lanes * itemsize + ncores * _ACC_ROWS * lanes * 4,
    )

    def in_map(p, k):
        return (p * n_k + k, 0)

    partials = pl.pallas_call(
        functools.partial(_l1_partial_kernel, scale=scale),
        out_shape=jax.ShapeDtypeStruct((ncores * _ACC_ROWS, lanes), jnp.float32),
        grid_spec=pltpu.PrefetchScalarGridSpec(
            num_scalar_prefetch=0,
            grid=(ncores, n_k),
            in_specs=[
                pl.BlockSpec((block_rows, lanes), in_map),
                pl.BlockSpec((block_rows, lanes), in_map),
            ],
            out_specs=pl.BlockSpec((_ACC_ROWS, lanes), lambda p, k: (p, 0)),
        ),
        compiler_params=pltpu.CompilerParams(
            dimension_semantics=("parallel", "arbitrary"),
        ),
        cost_estimate=cost,
    )(fake2d, real2d)

    return jnp.sum(partials)  # tiny (<= 64, 512) reduce outside the kernel


def content_loss(fake_feature_map, real_feature_map, weight):
    """weight * mean(|fake - real|)  — matches weight * nn.L1Loss()(fake, real)."""
    assert fake_feature_map.shape == real_feature_map.shape
    total = math.prod(fake_feature_map.shape)
    out_dtype = fake_feature_map.dtype

    # Fold weight/total into the kernel when weight is a static Python number
    # (it is in the reference module: set in __init__); otherwise apply it outside.
    static_weight = isinstance(weight, (int, float))
    scale = (float(weight) if static_weight else 1.0) / float(total)

    flat_f = fake_feature_map.reshape(-1)   # row-major flatten: free bitcast
    flat_r = real_feature_map.reshape(-1)

    kind = _device_kind()
    ncores = _num_tensorcores(kind)
    pref_rows = _preferred_block_rows(kind)

    tail_terms = []  # unscaled f32 partial sums handled outside the kernel

    # Lane-dense view: widest lane count dividing `total` -> zero-copy bitcast reshape.
    lanes = next((c for c in _LANE_CANDIDATES if total % c == 0), None)
    if lanes is None:
        # Rare ragged case (total not a multiple of 128): kernel over the 512-aligned
        # prefix (one prefix copy is unavoidable for the lane-dense view); the <512
        # element tail is reduced with jnp below.
        lanes = _LANE_CANDIDATES[0]
        rows_full = total // lanes
        prefix = rows_full * lanes
        tail_terms.append(
            jnp.sum(jnp.abs(flat_f[prefix:] - flat_r[prefix:]), dtype=jnp.float32))
        if rows_full == 0:
            # TODO(synk): inputs with < 512 elements are reduced entirely in jnp;
            # a Pallas launch is pure overhead at this size.
            loss32 = sum(tail_terms) * scale
            if not static_weight:
                loss32 = weight * loss32
            return loss32.astype(out_dtype)
        flat_f = flat_f[:prefix]
        flat_r = flat_r[:prefix]
    else:
        rows_full = total // lanes

    fake2d = flat_f.reshape(rows_full, lanes)
    real2d = flat_r.reshape(rows_full, lanes)

    if rows_full < ncores * _ACC_ROWS:
        ncores = 1

    if rows_full < _ACC_ROWS:
        # Tiny input: pad up to a single (32, lanes) tile (< 64 KiB of zeros; |0-0| = 0,
        # so the L1 sum stays exact).  The no-pad rule only matters for large streams.
        pad_rows = _ACC_ROWS - rows_full
        fake2d = jnp.pad(fake2d, ((0, pad_rows), (0, 0)))
        real2d = jnp.pad(real2d, ((0, pad_rows), (0, 0)))
        block_rows, n_k = _ACC_ROWS, 1
        kernel_rows = _ACC_ROWS
        row_tail = 0
    else:
        block_rows = min(pref_rows, (rows_full // ncores) // _ACC_ROWS * _ACC_ROWS)
        n_k = rows_full // (ncores * block_rows)
        kernel_rows = ncores * block_rows * n_k
        row_tail = rows_full - kernel_rows

    loss32 = _run_l1_kernel(
        fake2d, real2d, ncores=ncores, block_rows=block_rows, n_k=n_k, scale=scale)

    if row_tail:
        # Small ragged row tail (never DMA'd by the kernel): fold with a tiny jnp reduce.
        tail_terms.append(
            jnp.sum(jnp.abs(fake2d[kernel_rows:] - real2d[kernel_rows:]),
                    dtype=jnp.float32))

    if tail_terms:
        loss32 = loss32 + sum(tail_terms) * scale
    if not static_weight:
        loss32 = weight * loss32
    return loss32.astype(out_dtype)


if __name__ == "__main__":
    key = jax.random.PRNGKey(0)
    k1, k2 = jax.random.split(key)

    # Small NCHW feature maps, consistent with the module's forward signature.
    fake = jax.random.normal(k1, (2, 4, 16, 16), dtype=jnp.float32)
    real = jax.random.normal(k2, (2, 4, 16, 16), dtype=jnp.float32)
    weight = 0.5  # deterministic "parameter" from __init__(weight)

    loss = content_loss(fake, real, weight)
    loss = jax.block_until_ready(loss)

    # Reference check in plain JAX (same semantics as weight * nn.L1Loss()(fake, real)).
    ref = weight * jnp.mean(jnp.abs(fake - real))
    assert jnp.allclose(loss, ref, rtol=1e-5, atol=1e-6), (loss, ref)

    print("KERNEL_OK")
</pallas_src>

<mosaic_0001>
module attributes {stable_mosaic.version = 11 : i64} {
  func.func @_l1_partial_kernel(%arg0: i32, %arg1: i32, %arg2: memref<32x512xf32, #tpu.memory_space<vmem>>, %arg3: memref<32x512xf32, #tpu.memory_space<vmem>>, %arg4: memref<32x512xf32, #tpu.memory_space<vmem>>) attributes {dimension_semantics = [#tpu.dimension_semantics<parallel>, #tpu.dimension_semantics<arbitrary>], iteration_bounds = array<i64: 1, 1>, scalar_prefetch = 0 : i64, scratch_operands = 0 : i64, tpu.core_type = #tpu.core_type<tc>, window_params = [{transform_indices = @transform_0, window_bounds = array<i64: 32, 512>}, {transform_indices = @transform_1, window_bounds = array<i64: 32, 512>}, {transform_indices = @transform_2, window_bounds = array<i64: 32, 512>}]} {
    %c0_i32 = arith.constant 0 : i32
    %0 = arith.cmpi eq, %arg1, %c0_i32 : i32
    %1 = arith.extui %0 : i1 to i32
    %c0_i32_0 = arith.constant 0 : i32
    %2 = arith.cmpi ne, %1, %c0_i32_0 : i32
    scf.if %2 {
      %cst_10 = arith.constant 0.000000e+00 : f32
      %15 = vector.broadcast %cst_10 : f32 to vector<32x512xf32>
      %c0_11 = arith.constant 0 : index
      %c0_12 = arith.constant 0 : index
      %16 = vector.load %arg4[%c0_11, %c0_12] : memref<32x512xf32, #tpu.memory_space<vmem>>, vector<32x512xf32>
      tpu.vector_store %arg4[%c0_11, %c0_12], %15 {strides = array<i32>} : memref<32x512xf32, #tpu.memory_space<vmem>>, vector<32x512xf32>,
    } else {
    }
    %c0 = arith.constant 0 : index
    %c0_1 = arith.constant 0 : index
    %3 = vector.load %arg2[%c0, %c0_1] : memref<32x512xf32, #tpu.memory_space<vmem>>, vector<32x512xf32>
    %c0_2 = arith.constant 0 : index
    %c0_3 = arith.constant 0 : index
    %4 = vector.load %arg3[%c0_2, %c0_3] : memref<32x512xf32, #tpu.memory_space<vmem>>, vector<32x512xf32>
    %5 = arith.subf %3, %4 : vector<32x512xf32>
    %6 = math.absf %5 : vector<32x512xf32>
    %c0_4 = arith.constant 0 : index
    %c0_5 = arith.constant 0 : index
    %7 = vector.load %arg4[%c0_4, %c0_5] : memref<32x512xf32, #tpu.memory_space<vmem>>, vector<32x512xf32>
    %8 = vector.shape_cast %6 : vector<32x512xf32> to vector<1x32x512xf32>
    %cst = arith.constant dense<0.000000e+00> : vector<32x512xf32>
    %9 = vector.multi_reduction <add>, %8, %cst [0] : vector<1x32x512xf32> to vector<32x512xf32>
    %10 = arith.addf %7, %9 : vector<32x512xf32>
    %c0_6 = arith.constant 0 : index
    %c0_7 = arith.constant 0 : index
    %11 = vector.load %arg4[%c0_6, %c0_7] : memref<32x512xf32, #tpu.memory_space<vmem>>, vector<32x512xf32>
    tpu.vector_store %arg4[%c0_6, %c0_7], %10 {strides = array<i32>} : memref<32x512xf32, #tpu.memory_space<vmem>>, vector<32x512xf32>,
    %c0_i32_8 = arith.constant 0 : i32
    %12 = arith.cmpi eq, %arg1, %c0_i32_8 : i32
    %13 = arith.extui %12 : i1 to i32
    %c0_i32_9 = arith.constant 0 : i32
    %14 = arith.cmpi ne, %13, %c0_i32_9 : i32
    scf.if %14 {
      %c0_10 = arith.constant 0 : index
      %c0_11 = arith.constant 0 : index
      %15 = vector.load %arg4[%c0_10, %c0_11] : memref<32x512xf32, #tpu.memory_space<vmem>>, vector<32x512xf32>
      %cst_12 = arith.constant 2.44140625E-4 : f32
      %16 = vector.broadcast %cst_12 : f32 to vector<32x512xf32>
      %17 = arith.mulf %15, %16 : vector<32x512xf32>
      %c0_13 = arith.constant 0 : index
      %c0_14 = arith.constant 0 : index
      %18 = vector.load %arg4[%c0_13, %c0_14] : memref<32x512xf32, #tpu.memory_space<vmem>>, vector<32x512xf32>
      tpu.vector_store %arg4[%c0_13, %c0_14], %17 {strides = array<i32>} : memref<32x512xf32, #tpu.memory_space<vmem>>, vector<32x512xf32>,
    } else {
    }
    return
  }
  func.func @transform_0(%arg0: i32, %arg1: i32) -> (i32, i32) {
    %c1_i32 = arith.constant 1 : i32
    %0 = arith.muli %arg0, %c1_i32 : i32
    %1 = arith.addi %0, %arg1 : i32
    %c0_i32 = arith.constant 0 : i32
    %c0_i32_0 = arith.constant 0 : i32
    return %1, %c0_i32 : i32, i32
  }
  func.func @transform_1(%arg0: i32, %arg1: i32) -> (i32, i32) {
    %c1_i32 = arith.constant 1 : i32
    %0 = arith.muli %arg0, %c1_i32 : i32
    %1 = arith.addi %0, %arg1 : i32
    %c0_i32 = arith.constant 0 : i32
    %c0_i32_0 = arith.constant 0 : i32
    return %1, %c0_i32 : i32, i32
  }
  func.func @transform_2(%arg0: i32, %arg1: i32) -> (i32, i32) {
    %c0_i32 = arith.constant 0 : i32
    %c0_i32_0 = arith.constant 0 : i32
    return %arg0, %c0_i32 : i32, i32
  }
}

</mosaic_0001>

<bundles_post_ra>
// kernel: tpu_custom_call.1
= control target key start
LH: loop header
LB: loop body
LE: loop exit
PB: predicated region body
PF: predicated region fallthrough
CT: control target
= control target key end

     0   :  { %7 = vsyncpa [#allocation3], 0  ;;  %s414_s0 = inlined_call_operand.hbm [shape: f32[32,512], index: 0, kind: input, shape index: {}]   ;;  %s415_s1 = inlined_call_operand.hbm [shape: f32[32,512], index: 1, kind: input, shape index: {}]   ;;  %s416_s2 = inlined_call_operand.hbm [shape: f32[32,512], index: 2, kind: output, shape index: {}]  }
   0x1   :  { %8 = vsyncpa [#allocation6], 0 }
   0x2   :  { %9 = vsyncpa [#allocation4], 0  ;;  %s349_s9 = smov [#allocation2]   ;;  %s277_s13 = scalar_lea.hbm %s414_s0, 2048 }
   0x3   :  { %s20_s10 = sshll.u32 %s349_s9, 4  ;;  %p278_p0 = scmp.ne.s32.totalorder %s414_s0, %s277_s13  ;;  %s21_s10 = int_to_ptr.vmem [resolvable:$true] %s20_s10 }
   0x4   :  { %p281_p1 = scmp.lt.u32.totalorder %s277_s13, %s414_s0 }
   0x6   :  { %p283_p2 = pnand %p281_p1, %p278_p0 }
   0x8   :  { %286 = shalt.err (!%p283_p2)
}
   0x9   :  { %s287_s18 = scalar_lea.vmem %s21_s10, 2048  ;;  %p292_p4 = scmp.lt.s32.totalorder %s21_s10, %s21_s10 }
   0xa   :  { %p288_p3 = scmp.ne.s32.totalorder %s21_s10, %s287_s18  ;;  %p293_p5 = scmp.lt.s32.totalorder %s287_s18, %s287_s18 }
   0xc   :  { %p294_p6 = por %p293_p5, %p292_p4 }
   0xe   :  { %p295_p7 = pnand %p294_p6, %p288_p3 }
  0x10   :  { %298 = shalt.err (!%p295_p7)
}
  0x11   :  { %s350_s19 = smov 512   ;;  %s351_s20 = smov 32  }
  0x12   :  { %26 = dma.hbm_to_vmem [thread:$0]  %s414_s0, 2048, %s21_s10, [#allocation3], %s350_s19, %s350_s19, %s351_s20  }
  0x13   :  { %s352_s23 = smov [#allocation5]   ;;  %s299_s27 = scalar_lea.hbm %s415_s1, 2048 }
  0x14   :  { %s37_s24 = sshll.u32 %s352_s23, 4  ;;  %p300_p8 = scmp.ne.s32.totalorder %s415_s1, %s299_s27  ;;  %s38_s24 = int_to_ptr.vmem [resolvable:$true] %s37_s24 }
  0x15   :  { %p303_p9 = scmp.lt.u32.totalorder %s299_s27, %s415_s1 }
  0x17   :  { %p305_p10 = pnand %p303_p9, %p300_p8 }
  0x19   :  { %308 = shalt.err (!%p305_p10)
}
  0x1a   :  { %s309_s4 = scalar_lea.vmem %s38_s24, 2048  ;;  %p314_p12 = scmp.lt.s32.totalorder %s38_s24, %s38_s24 }
  0x1b   :  { %p310_p11 = scmp.ne.s32.totalorder %s38_s24, %s309_s4  ;;  %p315_p13 = scmp.lt.s32.totalorder %s309_s4, %s309_s4 }
  0x1d   :  { %p316_p0 = por %p315_p13, %p314_p12 }
  0x1f   :  { %p317_p1 = pnand %p316_p0, %p310_p11 }
  0x21   :  { %320 = shalt.err (!%p317_p1)
}
  0x22   :  { %43 = dma.hbm_to_vmem [thread:$0]  %s415_s1, 2048, %s38_s24, [#allocation6], %s350_s19, %s350_s19, %s351_s20  }
  0x23   :  { %343 = dma.done.wait [#allocation3], 2048  }
  0x24   :  { %344 = vsyncadd [#allocation3], 4294965248 }
  0x25   :  { %345 = dma.done.wait [#allocation6], 2048  }
  0x26   :  { %346 = vsyncadd [#allocation6], 4294965248  ;;  %v74_v0 = vld [vmem:[#allocation2] sm:$0xff]  ;;  %v75_v2 = vld [vmem:[#allocation2 + $0x8] sm:$0xff]  ;;  %s353_s1 = smov [#allocation7]  }
  0x27   :  { %v90_v1 = vld [vmem:[#allocation5] sm:$0xff]  ;;  %v91_v4 = vld [vmem:[#allocation5 + $0x8] sm:$0xff]  ;;  %v76_v5 = vld [vmem:[#allocation2 + $0x10] sm:$0xff]  ;;  %s258_s6 = sshll.u32 %s353_s1, 4  ;;  %s259_s6 = int_to_ptr.vmem [resolvable:$true] %s258_s6 }
  0x28   :  { %v106_v3 = vsub.f32 %v74_v0, %v90_v1  ;;  %v92_v6 = vld [vmem:[#allocation5 + $0x10] sm:$0xff]  ;;  %v107_v7 = vsub.f32 %v75_v2, %v91_v4  ;;  %v77_v9 = vld [vmem:[#allocation2 + $0x18] sm:$0xff]  ;;  %v78_v11 = vld [vmem:[#allocation2 + $0x20] sm:$0xff]  ;;  %s321_s7 = scalar_lea.vmem %s259_s6, 2048  ;;  %p326_p3 = scmp.lt.s32.totalorder %s259_s6, %s259_s6 }
  0x29   :  { %v108_v8 = vsub.f32 %v76_v5, %v92_v6  ;;  %v93_v10 = vld [vmem:[#allocation5 + $0x18] sm:$0xff]  ;;  %v94_v14 = vld [vmem:[#allocation5 + $0x20] sm:$0xff]  ;;  %v79_v15 = vld [vmem:[#allocation2 + $0x28] sm:$0xff]  ;;  %p322_p2 = scmp.ne.s32.totalorder %s259_s6, %s321_s7  ;;  %p327_p4 = scmp.lt.s32.totalorder %s321_s7, %s321_s7 }
  0x2a   :  { %v122_v12 = vand.u32 2147483647, %v106_v3  ;;  %v109_v13 = vsub.f32 %v77_v9, %v93_v10  ;;  %v95_v16 = vld [vmem:[#allocation5 + $0x28] sm:$0xff]  ;;  %v123_v17 = vand.u32 2147483647, %v107_v7  ;;  %v110_v19 = vsub.f32 %v78_v11, %v94_v14  ;;  %v80_v21 = vld [vmem:[#allocation2 + $0x30] sm:$0xff] }
  0x2b   :  { %v124_v18 = vand.u32 2147483647, %v108_v8  ;;  %v111_v20 = vsub.f32 %v79_v15, %v95_v16  ;;  %v96_v22 = vld [vmem:[#allocation5 + $0x30] sm:$0xff]  ;;  %v81_v25 = vld [vmem:[#allocation2 + $0x38] sm:$0xff]  ;;  %v82_v27 = vld [vmem:[#allocation2 + $0x40] sm:$0xff]  ;;  %p328_p5 = por %p327_p4, %p326_p3 }
  0x2c   :  { %v125_v23 = vand.u32 2147483647, %v109_v13  ;;  %v112_v24 = vsub.f32 %v80_v21, %v96_v22  ;;  %v97_v26 = vld [vmem:[#allocation5 + $0x38] sm:$0xff]  ;;  %v126_v28 = vand.u32 2147483647, %v110_v19  ;;  %v98_v30 = vld [vmem:[#allocation5 + $0x40] sm:$0xff] }
  0x2d   :  { %v127_v29 = vand.u32 2147483647, %v111_v20  ;;  %v83_v31 = vld [vmem:[#allocation2 + $0x48] sm:$0xff]  ;;  %v113_v33 = vsub.f32 %v81_v25, %v97_v26  ;;  %v114_v34 = vsub.f32 %v82_v27, %v98_v30  ;;  %v84_v36 = vld [vmem:[#allocation2 + $0x50] sm:$0xff]  ;;  %v85_v40 = vld [vmem:[#allocation2 + $0x58] sm:$0xff]  ;;  %v221_v62 = vmul.f32 0.00024414063, %v122_v12  ;;  %p329_p6 = pnand %p328_p5, %p322_p2 }
  0x2e   :  { %v128_v32 = vand.u32 2147483647, %v112_v24  ;;  %v99_v35 = vld [vmem:[#allocation5 + $0x48] sm:$0xff]  ;;  %v100_v37 = vld [vmem:[#allocation5 + $0x50] sm:$0xff]  ;;  %v101_v41 = vld [vmem:[#allocation5 + $0x58] sm:$0xff]  ;;  %v222_v0 = vmul.f32 0.00024414063, %v123_v17 }
  0x2f   :  { %v115_v38 = vsub.f32 %v83_v31, %v99_v35  ;;  %v116_v39 = vsub.f32 %v84_v36, %v100_v37  ;;  %v86_v42 = vld [vmem:[#allocation2 + $0x60] sm:$0xff]  ;;  %v129_v43 = vand.u32 2147483647, %v113_v33  ;;  %v130_v44 = vand.u32 2147483647, %v114_v34  ;;  %v87_v47 = vld [vmem:[#allocation2 + $0x68] sm:$0xff] }
  0x30   :  { %v117_v45 = vsub.f32 %v85_v40, %v101_v41  ;;  %v102_v46 = vld [vmem:[#allocation5 + $0x60] sm:$0xff]  ;;  %v103_v51 = vld [vmem:[#allocation5 + $0x68] sm:$0xff]  ;;  %v88_v52 = vld [vmem:[#allocation2 + $0x70] sm:$0xff]  ;;  %v223_v1 = vmul.f32 0.00024414063, %v124_v18  ;;  %237 = vst [vmem:[#allocation7] sm:$0xff] %v221_v62  ;;  %v224_v3 = vmul.f32 0.00024414063, %v125_v23 }
  0x31   :  { %v131_v48 = vand.u32 2147483647, %v115_v38  ;;  %v132_v49 = vand.u32 2147483647, %v116_v39  ;;  %v118_v50 = vsub.f32 %v86_v42, %v102_v46  ;;  %v119_v54 = vsub.f32 %v87_v47, %v103_v51  ;;  %v104_v55 = vld [vmem:[#allocation5 + $0x70] sm:$0xff]  ;;  %v89_v56 = vld [vmem:[#allocation2 + $0x78] sm:$0xff] }
  0x32   :  { %v133_v53 = vand.u32 2147483647, %v117_v45  ;;  %v105_v57 = vld [vmem:[#allocation5 + $0x78] sm:$0xff]  ;;  %v120_v59 = vsub.f32 %v88_v52, %v104_v55  ;;  %v225_v4 = vmul.f32 0.00024414063, %v126_v28  ;;  %238 = vst [vmem:[#allocation7 + $0x8] sm:$0xff] %v222_v0  ;;  %239 = vst [vmem:[#allocation7 + $0x10] sm:$0xff] %v223_v1 }
  0x33   :  { %v134_v58 = vand.u32 2147483647, %v118_v50  ;;  %v135_v60 = vand.u32 2147483647, %v119_v54  ;;  %v121_v61 = vsub.f32 %v89_v56, %v105_v57  ;;  %v226_v5 = vmul.f32 0.00024414063, %v127_v29  ;;  %240 = vst [vmem:[#allocation7 + $0x18] sm:$0xff] %v224_v3 }
  0x34   :  { %v136_v63 = vand.u32 2147483647, %v120_v59  ;;  %v227_v6 = vmul.f32 0.00024414063, %v128_v32  ;;  %v228_v7 = vmul.f32 0.00024414063, %v129_v43  ;;  %241 = vst [vmem:[#allocation7 + $0x20] sm:$0xff] %v225_v4  ;;  %v229_v8 = vmul.f32 0.00024414063, %v130_v44 }
  0x35   :  { %v137_v2 = vand.u32 2147483647, %v121_v61  ;;  %v230_v9 = vmul.f32 0.00024414063, %v131_v48  ;;  %v231_v10 = vmul.f32 0.00024414063, %v132_v49  ;;  %242 = vst [vmem:[#allocation7 + $0x28] sm:$0xff] %v226_v5  ;;  %v232_v11 = vmul.f32 0.00024414063, %v133_v53 }
  0x36   :  { %243 = vst [vmem:[#allocation7 + $0x30] sm:$0xff] %v227_v6  ;;  %244 = vst [vmem:[#allocation7 + $0x38] sm:$0xff] %v228_v7  ;;  %v233_v12 = vmul.f32 0.00024414063, %v134_v58  ;;  %v234_v13 = vmul.f32 0.00024414063, %v135_v60  ;;  %v235_v14 = vmul.f32 0.00024414063, %v136_v63 }
  0x37   :  { %245 = vst [vmem:[#allocation7 + $0x40] sm:$0xff] %v229_v8  ;;  %246 = vst [vmem:[#allocation7 + $0x48] sm:$0xff] %v230_v9  ;;  %v236_v15 = vmul.f32 0.00024414063, %v137_v2 }
  0x38   :  { %247 = vst [vmem:[#allocation7 + $0x50] sm:$0xff] %v231_v10  ;;  %248 = vst [vmem:[#allocation7 + $0x58] sm:$0xff] %v232_v11 }
  0x39   :  { %249 = vst [vmem:[#allocation7 + $0x60] sm:$0xff] %v233_v12  ;;  %250 = vst [vmem:[#allocation7 + $0x68] sm:$0xff] %v234_v13 }
  0x3a   :  { %251 = vst [vmem:[#allocation7 + $0x70] sm:$0xff] %v235_v14  ;;  %252 = vst [vmem:[#allocation7 + $0x78] sm:$0xff] %v236_v15 }
  0x3b   :  { %332 = shalt.err (!%p329_p6)
}
  0x3c   :  { %s333_s10 = scalar_lea.hbm %s416_s2, 2048 }
  0x3d   :  { %p334_p7 = scmp.ne.s32.totalorder %s416_s2, %s333_s10  ;;  %p337_p8 = scmp.lt.u32.totalorder %s333_s10, %s416_s2 }
  0x3f   :  { %p339_p9 = pnand %p337_p8, %p334_p7 }
  0x41   :  { %342 = shalt.err (!%p339_p9)
}
  0x42   :  { %264 = dma.vmem_to_hbm [thread:$0]  %s259_s6, 2048, %s416_s2, [#allocation4], %s350_s19, %s350_s19, %s351_s20  }
  0x43   :  { %347 = dma.done.wait [#allocation4], 2048  }
  0x44   :  { %348 = vsyncadd [#allocation4], 4294965248 }
  0x45   :  { %268 = vsyncpa [#allocation3], 1 }
  0x46   :  { %269 = vsyncpa [#allocation6], 1 }
  0x47   :  { %270 = vsyncpa [#allocation4], 1 }

</bundles_post_ra>
